<compile_context>
chip_gen: v7x
topology: tpu7x:2x2x1
jax: 0.10.0
libtpu: 0.0.40
codegen_flags: <defaults>
</compile_context>

<pallas_src>
import functools

import jax
import jax.numpy as jnp
from jax import lax
from jax.experimental import pallas as pl
from jax.experimental.pallas import tpu as pltpu


def _linear_kernel(x_ref, w_ref, b_ref, o_ref, acc_ref):
    """Computes one (tm, tn) output tile, reducing over the In grid axis.

    x_ref:   (tm, tk)  activation tile
    w_ref:   (tn, tk)  weight tile in PyTorch (Out, In) layout
    b_ref:   (1,  tn)  bias tile
    o_ref:   (tm, tn)  output tile (written once, at the last k step)
    acc_ref: (tm, tn)  f32 VMEM accumulator (persists across the k axis)
    """
    k = pl.program_id(2)

    # Fold the bias into the accumulator init: removes the epilogue add and
    # keeps the broadcast out of the hot reduction path.
    @pl.when(k == 0)
    def _init():
        acc_ref[...] = jnp.broadcast_to(b_ref[...], acc_ref.shape).astype(
            jnp.float32)

    # Contract on the shared In axis directly -> no in-kernel transpose,
    # MXU accumulates in f32.
    acc_ref[...] += lax.dot_general(
        x_ref[...], w_ref[...],
        dimension_numbers=(((1,), (1,)), ((), ())),
        preferred_element_type=jnp.float32,
    )

    @pl.when(k == pl.num_programs(2) - 1)
    def _store():
        o_ref[...] = acc_ref[...].astype(o_ref.dtype)


def _round_up(a, m):
    return ((a + m - 1) // m) * m


@jax.jit
def linear_regression_forward(x, weight, bias):
    """Equivalent of nn.Linear(input_size, output_size)(x).

    x:      (batch, input_size)        float32
    weight: (output_size, input_size)  float32  (PyTorch layout)
    bias:   (output_size,)             float32
    returns (batch, output_size)       float32
    """
    B, In = x.shape
    Out, In_w = weight.shape
    assert In == In_w and bias.shape == (Out,)

    # ---- tile selection: lane dims padded to 128-multiples, <= 256/512 tiles
    # (fits v7x's smaller VMEM; 128-multiples also keep v5e's MXU happy). ----
    In_p = _round_up(In, 128)
    tk = min(512, In_p)
    In_p = _round_up(In_p, tk)

    Out_p = _round_up(Out, 128)
    tn = min(256, Out_p)
    Out_p = _round_up(Out_p, tn)

    B_p = _round_up(B, 8)
    tm = min(256, B_p)
    B_p = _round_up(B_p, tm)

    # ---- zero-pad operands to tile multiples (zeros contribute nothing to
    # the contraction; padded rows/cols are sliced off afterwards). ----
    if (B_p, In_p) != (B, In):
        x = jnp.pad(x, ((0, B_p - B), (0, In_p - In)))
    if (Out_p, In_p) != (Out, In):
        weight = jnp.pad(weight, ((0, Out_p - Out), (0, In_p - In)))
    if Out_p != Out:
        bias = jnp.pad(bias, (0, Out_p - Out))
    bias2d = bias.reshape(1, Out_p)

    grid = (B_p // tm, Out_p // tn, In_p // tk)

    out_padded = pl.pallas_call(
        _linear_kernel,
        out_shape=jax.ShapeDtypeStruct((B_p, Out_p), x.dtype),
        grid=grid,
        in_specs=[
            pl.BlockSpec((tm, tk), lambda i, j, k: (i, k)),   # x tile
            pl.BlockSpec((tn, tk), lambda i, j, k: (j, k)),   # weight tile
            pl.BlockSpec((1, tn), lambda i, j, k: (0, j)),    # bias tile
        ],
        out_specs=pl.BlockSpec((tm, tn), lambda i, j, k: (i, j)),
        scratch_shapes=[pltpu.VMEM((tm, tn), jnp.float32)],
        compiler_params=pltpu.CompilerParams(
            dimension_semantics=("parallel", "parallel", "arbitrary")),
        cost_estimate=pl.CostEstimate(
            flops=2 * B * In * Out,
            transcendentals=0,
            bytes_accessed=4 * (B * In + Out * In + B * Out)),
    )(x, weight, bias2d)

    # Slice off the lane/row padding.
    return out_padded[:B, :Out]


if __name__ == "__main__":
    # Small shapes consistent with nn.Linear(input_size, output_size).
    batch, input_size, output_size = 16, 8, 4

    key = jax.random.PRNGKey(0)
    kx, kw, kb = jax.random.split(key, 3)

    # Deterministic init mimicking nn.Linear default: U(-1/sqrt(in), 1/sqrt(in))
    bound = 1.0 / (input_size ** 0.5)
    x = jax.random.normal(kx, (batch, input_size), dtype=jnp.float32)
    weight = jax.random.uniform(kw, (output_size, input_size),
                                minval=-bound, maxval=bound, dtype=jnp.float32)
    bias = jax.random.uniform(kb, (output_size,),
                              minval=-bound, maxval=bound, dtype=jnp.float32)

    out = linear_regression_forward(x, weight, bias)
    out = jax.block_until_ready(out)

    # Reference check against plain JAX (same math as torch nn.Linear).
    ref = x @ weight.T + bias
    assert out.shape == (batch, output_size)
    assert jnp.allclose(out, ref, atol=1e-5, rtol=1e-5)

    print("KERNEL_OK")
</pallas_src>

<mosaic_0001>
module attributes {stable_mosaic.version = 11 : i64} {
  func.func @_linear_kernel(%arg0: i32, %arg1: i32, %arg2: i32, %arg3: memref<16x128xf32, #tpu.memory_space<vmem>>, %arg4: memref<128x128xf32, #tpu.memory_space<vmem>>, %arg5: memref<1x128xf32, #tpu.memory_space<vmem>>, %arg6: memref<16x128xf32, #tpu.memory_space<vmem>>, %arg7: memref<16x128xf32, #tpu.memory_space<vmem>>) attributes {dimension_semantics = [#tpu.dimension_semantics<parallel>, #tpu.dimension_semantics<parallel>, #tpu.dimension_semantics<arbitrary>], iteration_bounds = array<i64: 1, 1, 1>, scalar_prefetch = 0 : i64, scratch_operands = 1 : i64, tpu.core_type = #tpu.core_type<tc>, window_params = [{transform_indices = @transform_0, window_bounds = array<i64: 16, 128>}, {transform_indices = @transform_1, window_bounds = array<i64: 128, 128>}, {transform_indices = @transform_2, window_bounds = array<i64: 1, 128>}, {transform_indices = @transform_3, window_bounds = array<i64: 16, 128>}]} {
    %c0_i32 = arith.constant 0 : i32
    %0 = arith.cmpi eq, %arg2, %c0_i32 : i32
    %1 = arith.extui %0 : i1 to i32
    %c0_i32_0 = arith.constant 0 : i32
    %2 = arith.cmpi ne, %1, %c0_i32_0 : i32
    scf.if %2 {
      %c0_10 = arith.constant 0 : index
      %c0_11 = arith.constant 0 : index
      %12 = vector.load %arg5[%c0_10, %c0_11] : memref<1x128xf32, #tpu.memory_space<vmem>>, vector<1x128xf32>
      %13 = vector.shape_cast %12 : vector<1x128xf32> to vector<1x128xf32>
      %14 = vector.broadcast %13 : vector<1x128xf32> to vector<16x128xf32>
      %c0_12 = arith.constant 0 : index
      %c0_13 = arith.constant 0 : index
      %15 = vector.load %arg7[%c0_12, %c0_13] : memref<16x128xf32, #tpu.memory_space<vmem>>, vector<16x128xf32>
      tpu.vector_store %arg7[%c0_12, %c0_13], %14 {strides = array<i32>} : memref<16x128xf32, #tpu.memory_space<vmem>>, vector<16x128xf32>,
    } else {
    }
    %c0 = arith.constant 0 : index
    %c0_1 = arith.constant 0 : index
    %3 = vector.load %arg7[%c0, %c0_1] : memref<16x128xf32, #tpu.memory_space<vmem>>, vector<16x128xf32>
    %c0_2 = arith.constant 0 : index
    %c0_3 = arith.constant 0 : index
    %4 = vector.load %arg3[%c0_2, %c0_3] : memref<16x128xf32, #tpu.memory_space<vmem>>, vector<16x128xf32>
    %c0_4 = arith.constant 0 : index
    %c0_5 = arith.constant 0 : index
    %5 = vector.load %arg4[%c0_4, %c0_5] : memref<128x128xf32, #tpu.memory_space<vmem>>, vector<128x128xf32>
    %cst = arith.constant dense<0.000000e+00> : vector<16x128xf32>
    %6 = tpu.matmul %4, %5, %cst {dimension_numbers = #tpu.dot_dimension_numbers<[1], [1], [0], [0], [0, 0, 1, 0], [], []>} : vector<16x128xf32>, vector<128x128xf32>, vector<16x128xf32> -> vector<16x128xf32>
    %7 = arith.addf %3, %6 : vector<16x128xf32>
    %c0_6 = arith.constant 0 : index
    %c0_7 = arith.constant 0 : index
    %8 = vector.load %arg7[%c0_6, %c0_7] : memref<16x128xf32, #tpu.memory_space<vmem>>, vector<16x128xf32>
    tpu.vector_store %arg7[%c0_6, %c0_7], %7 {strides = array<i32>} : memref<16x128xf32, #tpu.memory_space<vmem>>, vector<16x128xf32>,
    %c0_i32_8 = arith.constant 0 : i32
    %9 = arith.cmpi eq, %arg2, %c0_i32_8 : i32
    %10 = arith.extui %9 : i1 to i32
    %c0_i32_9 = arith.constant 0 : i32
    %11 = arith.cmpi ne, %10, %c0_i32_9 : i32
    scf.if %11 {
      %c0_10 = arith.constant 0 : index
      %c0_11 = arith.constant 0 : index
      %12 = vector.load %arg7[%c0_10, %c0_11] : memref<16x128xf32, #tpu.memory_space<vmem>>, vector<16x128xf32>
      %c0_12 = arith.constant 0 : index
      %c0_13 = arith.constant 0 : index
      %13 = vector.load %arg6[%c0_12, %c0_13] : memref<16x128xf32, #tpu.memory_space<vmem>>, vector<16x128xf32>
      tpu.vector_store %arg6[%c0_12, %c0_13], %12 {strides = array<i32>} : memref<16x128xf32, #tpu.memory_space<vmem>>, vector<16x128xf32>,
    } else {
    }
    return
  }
  func.func @transform_0(%arg0: i32, %arg1: i32, %arg2: i32) -> (i32, i32) {
    %c0_i32 = arith.constant 0 : i32
    return %arg0, %arg2 : i32, i32
  }
  func.func @transform_1(%arg0: i32, %arg1: i32, %arg2: i32) -> (i32, i32) {
    %c0_i32 = arith.constant 0 : i32
    return %arg1, %arg2 : i32, i32
  }
  func.func @transform_2(%arg0: i32, %arg1: i32, %arg2: i32) -> (i32, i32) {
    %c0_i32 = arith.constant 0 : i32
    %c0_i32_0 = arith.constant 0 : i32
    return %c0_i32, %arg1 : i32, i32
  }
  func.func @transform_3(%arg0: i32, %arg1: i32, %arg2: i32) -> (i32, i32) {
    %c0_i32 = arith.constant 0 : i32
    return %arg0, %arg1 : i32, i32
  }
}

</mosaic_0001>

<bundles_post_ra>
// kernel: linear_regression_forward.1
= control target key start
LH: loop header
LB: loop body
LE: loop exit
PB: predicated region body
PF: predicated region fallthrough
CT: control target
= control target key end

     0   :  { %s306_s1 = inlined_call_operand.vmem [shape: f32[128,128], index: 1, kind: input, shape index: {}]   ;;  %s307_s0 = inlined_call_operand.vmem [shape: f32[16,128], index: 0, kind: input, shape index: {}]   ;;  %s308_s2 = inlined_call_operand.vmem [shape: f32[1,128], index: 2, kind: input, shape index: {}]   ;;  %s309_s3 = inlined_call_operand.vmem [shape: f32[16,128], index: 3, kind: output, shape index: {}]  }
   0x1   :  { %v31_v0 = vld [vmem:[%s306_s1] sm:$0xff]  ;;  %v32_v1 = vld [vmem:[%s306_s1 + $0x8] sm:$0xff]  ;;  %v33_v2 = vld [vmem:[%s306_s1 + $0x10] sm:$0xff] }
   0x2   :  { %v191_v3 = vpack.c.bf16 %v32_v1, %v31_v0  ;;  %v34_v4 = vld [vmem:[%s306_s1 + $0x18] sm:$0xff]  ;;  %v29_v6 = vld [vmem:[%s307_s0] sm:$0xff]  ;;  %v36_v8 = vld [vmem:[%s306_s1 + $0x28] sm:$0xff] }
   0x3   :  { %v195_v5 = vpack.c.bf16 %v34_v4, %v33_v2  ;;  %v35_v7 = vld [vmem:[%s306_s1 + $0x20] sm:$0xff]  ;;  %188 = vmatprep.mubr.f32.mxu0 %v29_v6  ;;  %v37_v10 = vld [vmem:[%s306_s1 + $0x30] sm:$0xff]  ;;  %v38_v11 = vld [vmem:[%s306_s1 + $0x38] sm:$0xff] }
   0x4   :  { %192 = vmatprep.subr.bf16.mxu0 %v191_v3  ;;  %v199_v9 = vpack.c.bf16 %v36_v8, %v35_v7  ;;  %v203_v12 = vpack.c.bf16 %v38_v11, %v37_v10  ;;  %v39_v13 = vld [vmem:[%s306_s1 + $0x40] sm:$0xff]  ;;  %v40_v14 = vld [vmem:[%s306_s1 + $0x48] sm:$0xff]  ;;  %v41_v16 = vld [vmem:[%s306_s1 + $0x50] sm:$0xff] }
   0x5   :  { %194 = vmatpush3.bf16.xpose.msra.mxu0 %v191_v3  ;;  %v207_v15 = vpack.c.bf16 %v40_v14, %v39_v13  ;;  %v42_v17 = vld [vmem:[%s306_s1 + $0x58] sm:$0xff]  ;;  %v43_v19 = vld [vmem:[%s306_s1 + $0x60] sm:$0xff]  ;;  %v44_v20 = vld [vmem:[%s306_s1 + $0x68] sm:$0xff] }
   0x6   :  { %196 = vmatprep.subr.bf16.mxu0 %v195_v5  ;;  %v211_v18 = vpack.c.bf16 %v42_v17, %v41_v16  ;;  %v215_v21 = vpack.c.bf16 %v44_v20, %v43_v19  ;;  %v45_v22 = vld [vmem:[%s306_s1 + $0x70] sm:$0xff]  ;;  %v46_v23 = vld [vmem:[%s306_s1 + $0x78] sm:$0xff]  ;;  %v30_v25 = vld [vmem:[%s307_s0 + $0x8] sm:$0xff] }
   0x7   :  { %v219_v24 = vpack.c.bf16 %v46_v23, %v45_v22  ;;  %v137_v26 = vld [vmem:[%s308_s2] ss:$0 sm:$0xff] }
   0xd   :  { %198 = vmatpush3.bf16.xpose.msra.mxu0 %v195_v5 }
   0xe   :  { %200 = vmatprep.subr.bf16.mxu0 %v199_v9 }
  0x15   :  { %202 = vmatpush3.bf16.xpose.msra.mxu0 %v199_v9 }
  0x16   :  { %204 = vmatprep.subr.bf16.mxu0 %v203_v12 }
  0x1d   :  { %206 = vmatpush3.bf16.xpose.msra.mxu0 %v203_v12 }
  0x1e   :  { %208 = vmatprep.subr.bf16.mxu0 %v207_v15 }
  0x25   :  { %210 = vmatpush3.bf16.xpose.msra.mxu0 %v207_v15 }
  0x26   :  { %212 = vmatprep.subr.bf16.mxu0 %v211_v18 }
  0x2d   :  { %214 = vmatpush3.bf16.xpose.msra.mxu0 %v211_v18 }
  0x2e   :  { %216 = vmatprep.subr.bf16.mxu0 %v215_v21 }
  0x35   :  { %218 = vmatpush3.bf16.xpose.msra.mxu0 %v215_v21 }
  0x36   :  { %220 = vmatprep.subr.bf16.mxu0 %v219_v24 }
  0x3d   :  { %222 = vmatpush3.bf16.xpose.msra.mxu0 %v219_v24 }
  0x44   :  { %189 = vmatmul.mubr.f32.vlgmr.msra.gmra.mrb[0].mxu0 %v30_v25 }
 0x117   :  { %v190_v27 = vpop.f32.mrb[0].mxu0 }
 0x118   :  { %v123_v28 = vadd.f32 %v190_v27, %v137_v26  ;;  %v113_v29 = vpop.f32.mrb[1].mxu0 }
 0x119   :  { %v122_v30 = vadd.f32 %v137_v26, %v113_v29 }
 0x11a   :  { %132 = vst [vmem:[%s309_s3 + $0x8] sm:$0xff] %v123_v28 }
 0x11b   :  { %131 = vst [vmem:[%s309_s3] sm:$0xff] %v122_v30 }

</bundles_post_ra>
